<compile_context>
chip_gen: v7x
topology: tpu7x:2x2x1
jax: 0.10.0
libtpu: 0.0.40
codegen_flags: <defaults>
</compile_context>

<pallas_src>
import functools

import jax
import jax.numpy as jnp
from jax.experimental import pallas as pl
from jax.experimental.pallas import tpu as pltpu


def _round_up(x, m):
    return (x + m - 1) // m * m


def _cdiv(a, b):
    return (a + b - 1) // b


def _vmem_capacity_bytes():
    # Trace-time hardware query; fall back to the smallest current VMEM
    # (v7x: 64 MiB per TensorCore) so tiling is always safe.
    try:
        return int(pltpu.get_tpu_info().vmem_capacity_bytes)
    except Exception:
        return 64 * 1024 * 1024


def _pick_tiles(rows, H, M, itemsize, out_itemsize, vmem_cap):
    """VMEM-aware tile selection (works for 64 MiB v7x and 128 MiB v5e/v6e)."""
    lane = 128
    sublane = 16 if itemsize == 2 else 8

    # Avoid padding (and thus wrapper-side HBM copies of the weights) when the
    # feature dims are already lane-aligned — the common transformer case.
    Hp = H if H % lane == 0 else _round_up(H, lane)
    Mp = _round_up(M, lane)
    rows_a = _round_up(rows, sublane)

    budget = min(int(vmem_cap * 0.7), 100 * 1024 * 1024)

    # Resident (single fused step) iff both weights fit VMEM *including* the
    # pipeline's double buffering (2x) and the f32 fc1 intermediate stays modest.
    single_k = (4 * Hp * Mp * itemsize <= budget // 2) and Mp <= 2048
    if single_k:
        tk = Mp
    elif Mp % 512 == 0:          # prefer multiples of 256 for v6e/v7x 256-wide MXU
        tk = 512
    elif Mp % 256 == 0:
        tk = 256
    else:
        tk = 128

    def working_set(tm_, tk_, single_):
        return (2 * tm_ * Hp * itemsize               # x tile (double-buffered)
                + 2 * tm_ * Hp * out_itemsize         # out tile (double-buffered)
                + 4 * Hp * tk_ * itemsize             # w1 + w2 slices (double-buffered)
                + 4 * (tk_ + Hp) * 4                  # f32 biases (double-buffered)
                + tm_ * tk_ * 4                       # f32 fc1 intermediate
                + (0 if single_ else tm_ * Hp * 4))   # f32 accumulator scratch

    # Large row tile (good weight-DMA amortization on v5e); shrink tk before tm
    # until the working set fits the per-core VMEM budget (key for v7x).
    tm_cap = min(512, rows_a)
    while working_set(tm_cap, tk, single_k) > budget:
        if single_k and tk > 1024:
            single_k = False
            tk = 512 if Mp % 512 == 0 else (256 if Mp % 256 == 0 else 128)
        elif not single_k and tk > 128:
            tk //= 2
        elif tm_cap > 2 * sublane:
            tm_cap = _round_up(tm_cap // 2, sublane)
        else:
            break

    # Row tiling: spread rows evenly over tiles (minimal padding), and in the
    # resident path make sure there are >=2 parallel tiles so both v7x
    # TensorCores get work (free: resident weights are fetched only once).
    n_row = _cdiv(rows_a, tm_cap)
    if single_k and n_row < 2 and rows_a >= 2 * sublane:
        n_row = 2
    tm = _round_up(_cdiv(rows_a, n_row), sublane)
    rows_p = n_row * tm
    Mp = _round_up(Mp, tk)

    return tm, tk, rows_p, Hp, Mp, single_k, working_set(tm, tk, single_k)


def _mlp_kernel_fused(x_ref, w1_ref, b1_ref, w2_ref, b2_ref, o_ref):
    """Single-step fused fc1 -> ReLU -> fc2 (+biases); weights fully resident.

    No accumulator scratch: fc2 output goes straight to o_ref with the b2 add
    fused, saving a (tm, Hp) f32 VMEM store+load per row tile.
    Biases arrive pre-cast to f32 by the wrapper.
    """
    h = jnp.dot(x_ref[...], w1_ref[...], preferred_element_type=jnp.float32)
    h = jnp.maximum(h + b1_ref[...], 0.0)
    out = jnp.dot(h.astype(w2_ref.dtype), w2_ref[...],
                  preferred_element_type=jnp.float32)
    o_ref[...] = (out + b2_ref[...]).astype(o_ref.dtype)


def _mlp_kernel_streamed(x_ref, w1_ref, b1_ref, w2_ref, b2_ref, o_ref, acc_ref):
    """One (row-tile i, M-tile k) step; M streamed with an f32 VMEM accumulator."""
    k = pl.program_id(1)

    @pl.when(k == 0)
    def _init():
        acc_ref[...] = jnp.zeros_like(acc_ref)

    # fc1 partial: [tm, H] @ [H, tk] + b1[k-slice]; ReLU is elementwise, so the
    # per-k-slice activation is exact.
    h = jnp.dot(x_ref[...], w1_ref[...], preferred_element_type=jnp.float32)
    h = jnp.maximum(h + b1_ref[...], 0.0)

    # fc2 partial: [tm, tk] @ [tk, H], accumulated across k in f32.
    acc_ref[...] += jnp.dot(h.astype(w2_ref.dtype), w2_ref[...],
                            preferred_element_type=jnp.float32)

    @pl.when(k == pl.num_programs(1) - 1)
    def _finalize():
        o_ref[...] = (acc_ref[...] + b2_ref[...]).astype(o_ref.dtype)


@functools.partial(jax.jit, static_argnames=("compute_dtype",))
def mlp_pallas(x, w1, b1, w2, b2, *, compute_dtype="bfloat16"):
    """relu(x @ w1 + b1) @ w2 + b2 (dropout = identity / eval mode).

    x: [B, S, H]; w1: [H, M]; b1: [M]; w2: [M, H]; b2: [H] -> [B, S, H].
    compute_dtype: MXU input dtype for x/w1/w2 (default bf16; accumulation is
    always f32). Pass "float32" for exact compute, or None to follow x.dtype.
    """
    B, S, H = x.shape
    M = w1.shape[1]
    out_dtype = x.dtype

    cd = jnp.dtype(compute_dtype) if compute_dtype is not None else jnp.dtype(x.dtype)
    if x.dtype != cd:
        x = x.astype(cd)
    if w1.dtype != cd:
        w1 = w1.astype(cd)
    if w2.dtype != cd:
        w2 = w2.astype(cd)

    itemsize = cd.itemsize
    out_itemsize = jnp.dtype(out_dtype).itemsize
    rows = B * S

    vmem_cap = _vmem_capacity_bytes()
    tm, tk, rows_p, Hp, Mp, single_k, ws_bytes = _pick_tiles(
        rows, H, M, itemsize, out_itemsize, vmem_cap)

    # Zero-padding keeps the math exact: padded x columns meet zero w1 rows,
    # padded h columns are relu(0 + 0) = 0 and meet zero w2 rows, and padded
    # output rows/columns are sliced off below. Padding is skipped entirely
    # when shapes are already aligned (avoids HBM copies of the weights).
    x2d = x.reshape(rows, H)
    if rows_p != rows or Hp != H:
        x2d = jnp.pad(x2d, ((0, rows_p - rows), (0, Hp - H)))
    if Hp != H or Mp != M:
        w1 = jnp.pad(w1, ((0, Hp - H), (0, Mp - M)))
        w2 = jnp.pad(w2, ((0, Mp - M), (0, Hp - H)))
    b1p = b1.astype(jnp.float32).reshape(1, M)
    b2p = b2.astype(jnp.float32).reshape(1, H)
    if Mp != M:
        b1p = jnp.pad(b1p, ((0, 0), (0, Mp - M)))
    if Hp != H:
        b2p = jnp.pad(b2p, ((0, 0), (0, Hp - H)))

    n_row_tiles = rows_p // tm
    # Resident weights have a grid-constant block index -> fetched from HBM once;
    # streamed weights are re-fetched once per row tile.
    weight_passes = 1 if single_k else n_row_tiles
    cost = pl.CostEstimate(
        flops=4 * rows * H * M,  # 2*rows*H*M (fc1) + 2*rows*M*H (fc2)
        transcendentals=0,
        bytes_accessed=(rows * H * (itemsize + out_itemsize)
                        + 2 * H * M * itemsize * weight_passes
                        + (M + H) * 4),
    )
    vmem_limit = min(int(vmem_cap * 0.9), max(ws_bytes + (16 << 20), 32 << 20))

    if single_k:
        grid = (n_row_tiles,)
        kernel = _mlp_kernel_fused
        in_specs = [
            pl.BlockSpec((tm, Hp), lambda i: (i, 0)),   # x row tile
            pl.BlockSpec((Hp, Mp), lambda i: (0, 0)),   # fc1 weight (VMEM-resident)
            pl.BlockSpec((1, Mp), lambda i: (0, 0)),    # fc1 bias (f32)
            pl.BlockSpec((Mp, Hp), lambda i: (0, 0)),   # fc2 weight (VMEM-resident)
            pl.BlockSpec((1, Hp), lambda i: (0, 0)),    # fc2 bias (f32)
        ]
        out_specs = pl.BlockSpec((tm, Hp), lambda i: (i, 0))
        scratch_shapes = []
        dim_sems = ("parallel",)
    else:
        grid = (n_row_tiles, Mp // tk)
        kernel = _mlp_kernel_streamed
        in_specs = [
            pl.BlockSpec((tm, Hp), lambda i, k: (i, 0)),   # x row tile
            pl.BlockSpec((Hp, tk), lambda i, k: (0, k)),   # fc1 weight k-slice
            pl.BlockSpec((1, tk), lambda i, k: (0, k)),    # fc1 bias k-slice (f32)
            pl.BlockSpec((tk, Hp), lambda i, k: (k, 0)),   # fc2 weight k-slice
            pl.BlockSpec((1, Hp), lambda i, k: (0, 0)),    # fc2 bias (f32)
        ]
        out_specs = pl.BlockSpec((tm, Hp), lambda i, k: (i, 0))
        scratch_shapes = [pltpu.VMEM((tm, Hp), jnp.float32)]
        dim_sems = ("parallel", "arbitrary")

    out2d = pl.pallas_call(
        kernel,
        out_shape=jax.ShapeDtypeStruct((rows_p, Hp), out_dtype),
        grid_spec=pltpu.PrefetchScalarGridSpec(
            num_scalar_prefetch=0,
            grid=grid,
            in_specs=in_specs,
            out_specs=out_specs,
            scratch_shapes=scratch_shapes,
        ),
        compiler_params=pltpu.CompilerParams(
            dimension_semantics=dim_sems,
            vmem_limit_bytes=vmem_limit,
        ),
        cost_estimate=cost,
    )(x2d, w1, b1p, w2, b2p)

    if rows_p == rows and Hp == H:
        return out2d.reshape(B, S, H)     # no-op view: no extra HBM copy
    return out2d[:rows, :H].reshape(B, S, H)


def xavier_uniform(key, out_features, in_features, dtype=jnp.float32):
    # Matches torch.nn.init.xavier_uniform_ on a (out, in) weight matrix.
    bound = (6.0 / (in_features + out_features)) ** 0.5
    return jax.random.uniform(key, (out_features, in_features), dtype,
                              minval=-bound, maxval=bound)


def init_mlp_params(key, hidden_size, mlp_dim, dtype=jnp.float32):
    k1, k2, k3, k4 = jax.random.split(key, 4)
    # PyTorch Linear stores weight as (out, in) and computes x @ W.T + b.
    fc1_w = xavier_uniform(k1, mlp_dim, hidden_size, dtype)     # (M, H)
    fc2_w = xavier_uniform(k2, hidden_size, mlp_dim, dtype)     # (H, M)
    fc1_b = 1e-6 * jax.random.normal(k3, (mlp_dim,), dtype)
    fc2_b = 1e-6 * jax.random.normal(k4, (hidden_size,), dtype)
    # Pre-transpose for the x @ W layout used inside the kernel.
    return fc1_w.T, fc1_b, fc2_w.T, fc2_b                       # (H,M),(M,),(M,H),(H,)


def mlp_reference(x, w1, b1, w2, b2):
    h = jnp.maximum(x @ w1 + b1, 0.0)
    return h @ w2 + b2


if __name__ == "__main__":
    B, S, H, M = 2, 8, 32, 64  # batch, seq, hidden_size, transformer_mlp_dim

    key = jax.random.PRNGKey(0)
    kx, kp = jax.random.split(key)
    x = jax.random.normal(kx, (B, S, H), jnp.float32)
    w1, b1, w2, b2 = init_mlp_params(kp, H, M)

    ref = mlp_reference(x, w1, b1, w2, b2)

    # Default path: bf16 MXU inputs with f32 accumulation (loose tolerance).
    out = jax.block_until_ready(mlp_pallas(x, w1, b1, w2, b2))
    assert out.shape == (B, S, H) and out.dtype == x.dtype
    assert jnp.allclose(out, ref, atol=5e-2, rtol=5e-2), "bf16 path mismatch vs reference"

    # Exact f32 compute path (tight tolerance).
    out_f32 = jax.block_until_ready(
        mlp_pallas(x, w1, b1, w2, b2, compute_dtype="float32"))
    assert jnp.allclose(out_f32, ref, atol=1e-5, rtol=1e-5), "f32 path mismatch vs reference"

    print("KERNEL_OK")
</pallas_src>

<mosaic_0001>
module attributes {stable_mosaic.version = 11 : i64} {
  func.func @_mlp_kernel_fused(%arg0: i32, %arg1: memref<16x128xbf16, #tpu.memory_space<vmem>>, %arg2: memref<128x128xbf16, #tpu.memory_space<vmem>>, %arg3: memref<1x128xf32, #tpu.memory_space<vmem>>, %arg4: memref<128x128xbf16, #tpu.memory_space<vmem>>, %arg5: memref<1x128xf32, #tpu.memory_space<vmem>>, %arg6: memref<16x128xf32, #tpu.memory_space<vmem>>) attributes {dimension_semantics = [#tpu.dimension_semantics<parallel>], iteration_bounds = array<i64: 1>, scalar_prefetch = 0 : i64, scratch_operands = 0 : i64, tpu.core_type = #tpu.core_type<tc>, window_params = [{transform_indices = @transform_0, window_bounds = array<i64: 16, 128>}, {pipeline_mode = #tpu.pipeline_mode<synchronous>, transform_indices = @transform_1, window_bounds = array<i64: 128, 128>}, {pipeline_mode = #tpu.pipeline_mode<synchronous>, transform_indices = @transform_2, window_bounds = array<i64: 1, 128>}, {pipeline_mode = #tpu.pipeline_mode<synchronous>, transform_indices = @transform_3, window_bounds = array<i64: 128, 128>}, {pipeline_mode = #tpu.pipeline_mode<synchronous>, transform_indices = @transform_4, window_bounds = array<i64: 1, 128>}, {transform_indices = @transform_5, window_bounds = array<i64: 16, 128>}]} {
    %c0 = arith.constant 0 : index
    %c0_0 = arith.constant 0 : index
    %0 = vector.load %arg1[%c0, %c0_0] : memref<16x128xbf16, #tpu.memory_space<vmem>>, vector<16x128xbf16>
    %c0_1 = arith.constant 0 : index
    %c0_2 = arith.constant 0 : index
    %1 = vector.load %arg2[%c0_1, %c0_2] : memref<128x128xbf16, #tpu.memory_space<vmem>>, vector<128x128xbf16>
    %cst = arith.constant dense<0.000000e+00> : vector<16x128xf32>
    %2 = tpu.matmul %0, %1, %cst {dimension_numbers = #tpu.dot_dimension_numbers<[1], [0], [0], [1], [0, 0, 1, 1], [], []>} : vector<16x128xbf16>, vector<128x128xbf16>, vector<16x128xf32> -> vector<16x128xf32>
    %c0_3 = arith.constant 0 : index
    %c0_4 = arith.constant 0 : index
    %3 = vector.load %arg3[%c0_3, %c0_4] : memref<1x128xf32, #tpu.memory_space<vmem>>, vector<1x128xf32>
    %4 = vector.broadcast %3 : vector<1x128xf32> to vector<16x128xf32>
    %5 = arith.addf %2, %4 : vector<16x128xf32>
    %cst_5 = arith.constant 0.000000e+00 : f32
    %6 = vector.broadcast %cst_5 : f32 to vector<16x128xf32>
    %7 = arith.maximumf %5, %6 : vector<16x128xf32>
    %8 = arith.truncf %7 : vector<16x128xf32> to vector<16x128xbf16>
    %c0_6 = arith.constant 0 : index
    %c0_7 = arith.constant 0 : index
    %9 = vector.load %arg4[%c0_6, %c0_7] : memref<128x128xbf16, #tpu.memory_space<vmem>>, vector<128x128xbf16>
    %cst_8 = arith.constant dense<0.000000e+00> : vector<16x128xf32>
    %10 = tpu.matmul %8, %9, %cst_8 {dimension_numbers = #tpu.dot_dimension_numbers<[1], [0], [0], [1], [0, 0, 1, 1], [], []>} : vector<16x128xbf16>, vector<128x128xbf16>, vector<16x128xf32> -> vector<16x128xf32>
    %c0_9 = arith.constant 0 : index
    %c0_10 = arith.constant 0 : index
    %11 = vector.load %arg5[%c0_9, %c0_10] : memref<1x128xf32, #tpu.memory_space<vmem>>, vector<1x128xf32>
    %12 = vector.broadcast %11 : vector<1x128xf32> to vector<16x128xf32>
    %13 = arith.addf %10, %12 : vector<16x128xf32>
    %c0_11 = arith.constant 0 : index
    %c0_12 = arith.constant 0 : index
    %14 = vector.load %arg6[%c0_11, %c0_12] : memref<16x128xf32, #tpu.memory_space<vmem>>, vector<16x128xf32>
    tpu.vector_store %arg6[%c0_11, %c0_12], %13 {strides = array<i32>} : memref<16x128xf32, #tpu.memory_space<vmem>>, vector<16x128xf32>,
    return
  }
  func.func @transform_0(%arg0: i32) -> (i32, i32) {
    %c0_i32 = arith.constant 0 : i32
    %c0_i32_0 = arith.constant 0 : i32
    return %arg0, %c0_i32 : i32, i32
  }
  func.func @transform_1(%arg0: i32) -> (i32, i32) {
    %c0_i32 = arith.constant 0 : i32
    %c0_i32_0 = arith.constant 0 : i32
    %c0_i32_1 = arith.constant 0 : i32
    return %c0_i32, %c0_i32_0 : i32, i32
  }
  func.func @transform_2(%arg0: i32) -> (i32, i32) {
    %c0_i32 = arith.constant 0 : i32
    %c0_i32_0 = arith.constant 0 : i32
    %c0_i32_1 = arith.constant 0 : i32
    return %c0_i32, %c0_i32_0 : i32, i32
  }
  func.func @transform_3(%arg0: i32) -> (i32, i32) {
    %c0_i32 = arith.constant 0 : i32
    %c0_i32_0 = arith.constant 0 : i32
    %c0_i32_1 = arith.constant 0 : i32
    return %c0_i32, %c0_i32_0 : i32, i32
  }
  func.func @transform_4(%arg0: i32) -> (i32, i32) {
    %c0_i32 = arith.constant 0 : i32
    %c0_i32_0 = arith.constant 0 : i32
    %c0_i32_1 = arith.constant 0 : i32
    return %c0_i32, %c0_i32_0 : i32, i32
  }
  func.func @transform_5(%arg0: i32) -> (i32, i32) {
    %c0_i32 = arith.constant 0 : i32
    %c0_i32_0 = arith.constant 0 : i32
    return %arg0, %c0_i32 : i32, i32
  }
}

</mosaic_0001>

<bundles_post_ra>
// kernel: mlp_pallas.1
= control target key start
LH: loop header
LB: loop body
LE: loop exit
PB: predicated region body
PF: predicated region fallthrough
CT: control target
= control target key end

     0   :  { %v358_v0 = vmov 0.0   ;;  %vm359_vm0 = vmmov 0   ;;  %s453_s1 = inlined_call_operand.vmem [shape: bf16[128,128], index: 1, kind: input, shape index: {}]   ;;  %s454_s3 = inlined_call_operand.vmem [shape: bf16[128,128], index: 3, kind: input, shape index: {}]   ;;  %s455_s0 = inlined_call_operand.vmem [shape: bf16[16,128], index: 0, kind: input, shape index: {}]   ;;  %s456_s2 = inlined_call_operand.vmem [shape: f32[1,128], index: 2, kind: input, shape index: {}]   ;;  %s457_s4 = inlined_call_operand.vmem [shape: f32[1,128], index: 4, kind: input, shape index: {}]   ;;  %s458_s5 = inlined_call_operand.vmem [shape: f32[16,128], index: 5, kind: output, shape index: {}]  }
   0x1   :  { %299 = vmatprep.subr.bf16.mxu0 %v358_v0  ;;  %v341_v1 = vld [vmem:[%s453_s1] sm:$0xff]   ;;  %315 = vmatprep.mubr.msk.bf16.mxu0 %vm359_vm0, %v358_v0  ;;  %v342_v2 = vld [vmem:[%s453_s1 + $0x8] sm:$0xff]   ;;  %v343_v3 = vld [vmem:[%s453_s1 + $0x10] sm:$0xff]  }
   0x2   :  { %319 = vmatprep.subr.bf16.mxu1 %v358_v0  ;;  %335 = vmatprep.mubr.msk.bf16.mxu1 %vm359_vm0, %v358_v0  ;;  %v350_v4 = vld [vmem:[%s454_s3] sm:$0xff]   ;;  %v344_v5 = vld [vmem:[%s453_s1 + $0x18] sm:$0xff]   ;;  %v351_v6 = vld [vmem:[%s454_s3 + $0x8] sm:$0xff]  }
   0x3   :  { %300 = vmatpush3.bf16.msra.mxu0 %v341_v1  ;;  %320 = vmatpush3.bf16.msra.mxu1 %v350_v4  ;;  %v345_v7 = vld [vmem:[%s453_s1 + $0x20] sm:$0xff]   ;;  %v352_v8 = vld [vmem:[%s454_s3 + $0x10] sm:$0xff]   ;;  %v346_v9 = vld [vmem:[%s453_s1 + $0x28] sm:$0xff]  }
   0x4   :  { %301 = vmatprep.subr.bf16.mxu0 %v358_v0  ;;  %321 = vmatprep.subr.bf16.mxu1 %v358_v0  ;;  %v353_v10 = vld [vmem:[%s454_s3 + $0x18] sm:$0xff]   ;;  %v347_v11 = vld [vmem:[%s453_s1 + $0x30] sm:$0xff]   ;;  %v354_v12 = vld [vmem:[%s454_s3 + $0x20] sm:$0xff]  }
   0x5   :  { %v348_v13 = vld [vmem:[%s453_s1 + $0x38] sm:$0xff]   ;;  %v355_v14 = vld [vmem:[%s454_s3 + $0x28] sm:$0xff]   ;;  %v349_v15 = vld [vmem:[%s455_s0] sm:$0xff]  }
   0x6   :  { %v356_v16 = vld [vmem:[%s454_s3 + $0x30] sm:$0xff]   ;;  %v357_v17 = vld [vmem:[%s454_s3 + $0x38] sm:$0xff]   ;;  %v262_v18 = vld [vmem:[%s456_s2] ss:$0 sm:$0xff] }
   0x7   :  { %302 = vmatpush3.bf16.msra.mxu0 %v342_v2  ;;  %322 = vmatpush3.bf16.msra.mxu1 %v351_v6  ;;  %v272_v28 = vld [vmem:[%s457_s4] ss:$0 sm:$0xff] }
   0x8   :  { %303 = vmatprep.subr.bf16.mxu0 %v358_v0  ;;  %323 = vmatprep.subr.bf16.mxu1 %v358_v0 }
   0xb   :  { %304 = vmatpush3.bf16.msra.mxu0 %v343_v3  ;;  %324 = vmatpush3.bf16.msra.mxu1 %v352_v8 }
   0xc   :  { %305 = vmatprep.subr.bf16.mxu0 %v358_v0  ;;  %325 = vmatprep.subr.bf16.mxu1 %v358_v0 }
   0xf   :  { %306 = vmatpush3.bf16.msra.mxu0 %v344_v5  ;;  %326 = vmatpush3.bf16.msra.mxu1 %v353_v10 }
  0x10   :  { %307 = vmatprep.subr.bf16.mxu0 %v358_v0  ;;  %327 = vmatprep.subr.bf16.mxu1 %v358_v0 }
  0x13   :  { %308 = vmatpush3.bf16.msra.mxu0 %v345_v7  ;;  %328 = vmatpush3.bf16.msra.mxu1 %v354_v12 }
  0x14   :  { %309 = vmatprep.subr.bf16.mxu0 %v358_v0  ;;  %329 = vmatprep.subr.bf16.mxu1 %v358_v0 }
  0x17   :  { %310 = vmatpush3.bf16.msra.mxu0 %v346_v9  ;;  %330 = vmatpush3.bf16.msra.mxu1 %v355_v14 }
  0x18   :  { %311 = vmatprep.subr.bf16.mxu0 %v358_v0  ;;  %331 = vmatprep.subr.bf16.mxu1 %v358_v0 }
  0x1b   :  { %312 = vmatpush3.bf16.msra.mxu0 %v347_v11  ;;  %332 = vmatpush3.bf16.msra.mxu1 %v356_v16 }
  0x1c   :  { %313 = vmatprep.subr.bf16.mxu0 %v358_v0  ;;  %333 = vmatprep.subr.bf16.mxu1 %v358_v0 }
  0x1f   :  { %314 = vmatpush3.bf16.msra.mxu0 %v348_v13  ;;  %334 = vmatpush3.bf16.msra.mxu1 %v357_v17 }
  0x22   :  { %316 = vmatmul.mubr.bf16.vlgmr.msra.gmra.mrb[0].mxu0 %v349_v15 }
  0xf5   :  { %v134_v19 = vpop.f32.mrb[0].mxu0 }
  0xf6   :  { %v135_v20 = vadd.f32 %v262_v18, %v134_v19  ;;  %v317_v21 = vpop.f32.mrb[1].mxu0 }
  0xf7   :  { %v137_v22 = vpop.f32.mrb[2].mxu0 }
  0xf8   :  { %v138_v23 = vadd.f32 %v262_v18, %v137_v22  ;;  %v318_v24 = vpop.f32.mrb[3].mxu0  ;;  %v141_v25 = vmax.f32 %v135_v20, 0.0 }
  0xfa   :  { %v142_v26 = vmax.f32 %v138_v23, 0.0 }
  0xfc   :  { %v143_v27 = vpack.c.bf16 %v142_v26, %v141_v25 }
  0xfe   :  { %336 = vmatmul.mubr.bf16.vlgmr.msra.gmra.mrb[0].mxu1 %v143_v27 }
 0x1d1   :  { %v249_v29 = vpop.f32.mrb[0].mxu1 }
 0x1d2   :  { %v250_v30 = vadd.f32 %v272_v28, %v249_v29  ;;  %v337_v31 = vpop.f32.mrb[1].mxu1 }
 0x1d3   :  { %v252_v32 = vpop.f32.mrb[2].mxu1 }
 0x1d4   :  { %256 = vst [vmem:[%s458_s5] sm:$0xff] %v250_v30  ;;  %v253_v33 = vadd.f32 %v272_v28, %v252_v32  ;;  %v338_v34 = vpop.f32.mrb[3].mxu1 }
 0x1d6   :  { %257 = vst [vmem:[%s458_s5 + $0x8] sm:$0xff] %v253_v33 }

</bundles_post_ra>
